<compile_context>
chip_gen: v6e
topology: v6e:2x2x1
jax: 0.10.0
libtpu: 0.0.40
codegen_flags: <defaults>
</compile_context>

<pallas_src>
import functools
import math

import jax
import jax.numpy as jnp
import numpy as np
from jax import lax
from jax.experimental import pallas as pl
from jax.experimental.pallas import tpu as pltpu

# CombinedMarginLoss(64, 1.0, 0.5, 0) constants (ArcFace branch, easy_margin=False)
S = 64.0
M2 = 0.5
COS_M = math.cos(M2)
SIN_M = math.sin(M2)
THETA = math.cos(math.pi - M2)
SINMM = math.sin(math.pi - M2) * M2
EPS_NORM = 1e-12
EPS_LOG = 1e-30
MAX_LOSS = -math.log(EPS_LOG)      # loss of a row whose target prob clamps / is ignored
NEG_LARGE = -1e30                  # finite "minus infinity" (stays NaN-free)
_LANES = 128


def _round_up(x, m):
    return ((x + m - 1) // m) * m


def _l2_normalize(x):
    # F.normalize(x, dim=-1, eps=1e-12) == x * rsqrt(max(sum(x^2), eps^2))
    ss = jnp.sum(x * x, axis=-1, keepdims=True)
    return x * lax.rsqrt(jnp.maximum(ss, EPS_NORM * EPS_NORM))


# --------------------------------------------------------------------------- #
# Kernel
# --------------------------------------------------------------------------- #
def _partial_fc_kernel(emb_ref, w_ref, label_ref, out_ref,
                       m_ref, l_ref, t_ref,
                       *, num_real_classes, mask_classes, mxu_dtype):
    j = pl.program_id(1)
    n_c = pl.num_programs(1)

    # ---- once per B-tile: reset the per-lane accumulators -------------------
    @pl.when(j == 0)
    def _init():
        m_ref[...] = jnp.full(m_ref.shape, NEG_LARGE, jnp.float32)
        l_ref[...] = jnp.zeros(l_ref.shape, jnp.float32)
        t_ref[...] = jnp.zeros(t_ref.shape, jnp.float32)

    # Pre-normalized operands; the weight tile is streamed as (D, tc) so this
    # is a plain NN matmul on the MXU (no transpose, no re-normalization).
    e = emb_ref[...].astype(mxu_dtype)
    w = w_ref[...].astype(mxu_dtype)
    logits = jnp.dot(e, w, preferred_element_type=jnp.float32)    # (tb, tc) f32
    logits = jnp.clip(logits, -1.0, 1.0)

    tb, tc = logits.shape
    labels = label_ref[...]                                       # (tb, 1) int32
    col = j * tc + lax.broadcasted_iota(jnp.int32, (1, tc), 1)    # (1, tc)
    onehot = col == labels                 # (tb, tc) via broadcast; label == -1 never hits

    # The target column is excluded from the running LSE and re-added WITH the
    # ArcFace margin in the finalize step (logaddexp -> no cancellation).
    scaled = jnp.where(onehot, NEG_LARGE, logits * S)
    if mask_classes:                       # padded class columns -> exp() == 0
        scaled = jnp.where(col < num_real_classes, scaled, NEG_LARGE)
    tgt = jnp.where(onehot, logits, 0.0)   # target cosine, 0 elsewhere

    # ---- per-lane accumulation (pure VPU/EUP, no cross-lane XLU here) -------
    n_chunks = tc // _LANES

    t_acc = t_ref[...]
    for k in range(n_chunks):
        t_acc = t_acc + tgt[:, k * _LANES:(k + 1) * _LANES]
    t_ref[...] = t_acc

    m_prev = m_ref[...]
    m_new = m_prev
    for k in range(n_chunks):
        m_new = jnp.maximum(m_new, scaled[:, k * _LANES:(k + 1) * _LANES])
    l_new = l_ref[...] * jnp.exp(m_prev - m_new)
    for k in range(n_chunks):
        l_new = l_new + jnp.exp(scaled[:, k * _LANES:(k + 1) * _LANES] - m_new)
    m_ref[...] = m_new
    l_ref[...] = l_new

    # ---- finalize on the last class tile (XLU reductions once per B-tile) ---
    @pl.when(j == n_c - 1)
    def _finalize():
        t = jnp.sum(t_ref[...], axis=-1, keepdims=True)           # (tb, 1)
        sin_t = jnp.sqrt(jnp.maximum(1.0 - t * t, 0.0))
        ft = jnp.where(t > THETA, t * COS_M - sin_t * SIN_M, t - SINMM)
        tgt_scaled = ft * S

        m_lane = m_ref[...]                                        # (tb, 128)
        m_row = jnp.max(m_lane, axis=-1, keepdims=True)            # (tb, 1)
        m_all = jnp.maximum(m_row, tgt_scaled)
        # lanes that never saw a real class keep m_lane == NEG_LARGE; their
        # (garbage) l contribution is zeroed by exp(NEG_LARGE - m_all) == 0.
        l_all = (jnp.sum(l_ref[...] * jnp.exp(m_lane - m_all), axis=-1, keepdims=True)
                 + jnp.exp(tgt_scaled - m_all))
        lse = m_all + jnp.log(l_all)

        # -log(clamp_min(p_target, 1e-30)) == min(lse - s*final_t, -log(1e-30))
        loss = jnp.minimum(lse - tgt_scaled, MAX_LOSS)
        loss = jnp.where(labels != -1, loss, MAX_LOSS)             # ignored rows: p = 0
        out_ref[...] = jnp.broadcast_to(loss, out_ref.shape)       # lane-dense store


# --------------------------------------------------------------------------- #
# Wrapper
# --------------------------------------------------------------------------- #
def _resolve_vmem_limit(user_limit):
    if user_limit is not None:
        return int(user_limit)
    try:
        cap = int(pltpu.get_tpu_info().vmem_capacity_bytes)
    except Exception:
        return None        # fall back to the compiler's default scoped limit
    # leave headroom for Mosaic-internal scratch / pipelining overhead
    return max(32 << 20, min(cap - (16 << 20), 112 << 20))


@functools.partial(jax.jit,
                   static_argnames=("tb", "tc", "mxu_dtype", "weight_store_dtype",
                                    "vmem_limit_bytes", "weight_buffer_count"))
def _partial_fc_v2_loss_impl(embeddings, weight, labels, *, tb, tc,
                             mxu_dtype, weight_store_dtype, vmem_limit_bytes,
                             weight_buffer_count):
    B, D = embeddings.shape
    C, _ = weight.shape
    b_pad = _round_up(B, tb)
    c_pad = _round_up(C, tc)

    # ---- one-time XLA preprocessing (streamed once, not per B-tile) ---------
    e_n = _l2_normalize(embeddings.astype(jnp.float32)).astype(mxu_dtype)
    w_n = _l2_normalize(weight.astype(jnp.float32)).astype(weight_store_dtype)
    w_n_t = w_n.T                                                  # (D, C): NN matmul layout

    lab = labels.reshape(-1).astype(jnp.int32)
    lab = jnp.where((lab >= 0) & (lab < C), lab, -1)               # out-of-range -> ignored
    if b_pad != B:
        lab = jnp.pad(lab, (0, b_pad - B), constant_values=-1)
        e_n = jnp.pad(e_n, ((0, b_pad - B), (0, 0)))
    if c_pad != C:
        w_n_t = jnp.pad(w_n_t, ((0, 0), (0, c_pad - C)))
    lab = lab.reshape(b_pad, 1)

    kernel = functools.partial(_partial_fc_kernel,
                               num_real_classes=C,
                               mask_classes=(c_pad != C),
                               mxu_dtype=mxu_dtype)

    w_index_map = lambda i, j: (0, j)
    if weight_buffer_count == 2:
        w_spec = pl.BlockSpec((D, tc), w_index_map)
    else:     # deepen the weight stream if xprof shows exposed DMA
        w_spec = pl.BlockSpec((D, tc), w_index_map,
                              pipeline_mode=pl.Buffered(weight_buffer_count))

    per_row = pl.pallas_call(
        kernel,
        out_shape=jax.ShapeDtypeStruct((b_pad, _LANES), jnp.float32),
        grid_spec=pltpu.PrefetchScalarGridSpec(
            num_scalar_prefetch=0,
            grid=(b_pad // tb, c_pad // tc),
            in_specs=[
                pl.BlockSpec((tb, D), lambda i, j: (i, 0)),   # normalized embeddings (resident over j)
                w_spec,                                       # streamed pre-normalized (D, tc) tiles
                pl.BlockSpec((tb, 1), lambda i, j: (i, 0)),   # labels
            ],
            out_specs=pl.BlockSpec((tb, _LANES), lambda i, j: (i, 0)),
            scratch_shapes=[
                pltpu.VMEM((tb, _LANES), jnp.float32),   # per-lane running max
                pltpu.VMEM((tb, _LANES), jnp.float32),   # per-lane running sum(exp)
                pltpu.VMEM((tb, _LANES), jnp.float32),   # per-lane target-cosine partials
            ],
        ),
        compiler_params=pltpu.CompilerParams(
            dimension_semantics=("parallel", "arbitrary"),
            vmem_limit_bytes=vmem_limit_bytes,
        ),
    )(e_n, w_n_t, lab)

    return jnp.mean(per_row[:B, 0])


def partial_fc_v2_loss(embeddings, weight, labels, *,
                       block_b=None, block_c=None,
                       mxu_dtype=jnp.bfloat16, weight_store_dtype=None,
                       vmem_limit_bytes=None, weight_buffer_count=2):
    """PartialFC_V2 forward loss (world_size=1, sample_rate=1.0).

    embeddings: (B, D) float; weight: (C, D) float; labels: (B,) int.

    Tuning notes:
      * block_b (batch tile) is the arithmetic-intensity lever on the streamed
        weight (~2*tb FLOP/elem); default 256, rounded to 16 for bf16 packing.
        On v7x make sure B/block_b >= 2 once compute-bound so both TCs engage.
      * block_c (class tile) default 2048, auto-shrunk to the VMEM budget
        (v7x 64 MiB vs v5e/v6e 128 MiB, queried via pltpu.get_tpu_info()).
      * weight_store_dtype controls the HBM weight stream (bf16 default;
        e.g. jnp.float8_e4m3fn on v7x halves the streamed bytes).
      * mxu_dtype=jnp.float32 gives an fp32-matmul validation mode.
    """
    B, D = embeddings.shape
    C, D2 = weight.shape
    assert D == D2
    if weight_store_dtype is None:
        weight_store_dtype = mxu_dtype

    vmem_limit = _resolve_vmem_limit(vmem_limit_bytes)

    tb = block_b if block_b is not None else 256
    tb = min(_round_up(tb, 16), _round_up(B, 16))
    tc = block_c if block_c is not None else 2048
    tc = min(_round_up(tc, 128), _round_up(C, 128))

    # shrink the class tile until the per-step working set fits the VMEM budget
    w_bytes = np.dtype(weight_store_dtype).itemsize
    e_bytes = np.dtype(mxu_dtype).itemsize
    budget = int(0.7 * (vmem_limit if vmem_limit is not None else (32 << 20)))

    def _est(tc_):
        return (weight_buffer_count * D * tc_ * w_bytes   # multi-buffered weight tile
                + 4 * tb * tc_ * 4                        # f32 logits / select temps
                + 2 * tb * D * e_bytes                    # embedding tile
                + 8 * tb * _LANES * 4)                    # accumulators + output

    while tc > 128 and _est(tc) > budget:
        tc = max(128, _round_up(tc // 2, 128))

    return _partial_fc_v2_loss_impl(
        embeddings, weight, labels, tb=tb, tc=tc, mxu_dtype=mxu_dtype,
        weight_store_dtype=weight_store_dtype, vmem_limit_bytes=vmem_limit,
        weight_buffer_count=weight_buffer_count)


# --------------------------------------------------------------------------- #
# Pure-JAX reference (mirrors the PyTorch forward, world_size=1)
# --------------------------------------------------------------------------- #
def _reference_loss(embeddings, weight, labels, *, mxu_dtype=jnp.float32):
    e = embeddings.astype(jnp.float32)
    w = weight.astype(jnp.float32)
    lab = labels.reshape(-1).astype(jnp.int32)
    C = w.shape[0]
    lab = jnp.where((lab >= 0) & (lab < C), lab, -1)
    e_n = _l2_normalize(e).astype(mxu_dtype)
    w_n = _l2_normalize(w).astype(mxu_dtype)
    logits = jnp.dot(e_n, w_n.T, preferred_element_type=jnp.float32)
    logits = jnp.clip(logits, -1.0, 1.0)
    onehot = (lab[:, None] >= 0) & (jnp.arange(C)[None, :] == lab[:, None])
    t = jnp.sum(jnp.where(onehot, logits, 0.0), axis=-1, keepdims=True)
    sin_t = jnp.sqrt(jnp.maximum(1.0 - t * t, 0.0))
    final_t = jnp.where(t > THETA, t * COS_M - sin_t * SIN_M, t - SINMM)
    logits = jnp.where(onehot, final_t, logits) * S
    m = jnp.max(logits, axis=-1, keepdims=True)
    ex = jnp.exp(logits - m)
    p = ex / jnp.sum(ex, axis=-1, keepdims=True)
    row = jnp.where(lab[:, None] != -1,
                    jnp.sum(jnp.where(onehot, p, 0.0), axis=-1, keepdims=True),
                    0.0)
    return -jnp.mean(jnp.log(jnp.maximum(row, EPS_LOG)))


if __name__ == "__main__":
    # small but MXU/lane-aligned demo shapes
    B, D, C = 32, 128, 512        # batch, embedding_size, num_classes (single rank)

    key = jax.random.PRNGKey(0)
    k_emb, k_w, k_lab = jax.random.split(key, 3)

    embeddings = jax.random.normal(k_emb, (B, D), dtype=jnp.float32)
    # torch.normal(0, 0.01, (num_local, embedding_size))
    weight = 0.01 * jax.random.normal(k_w, (C, D), dtype=jnp.float32)
    labels = jax.random.randint(k_lab, (B,), 0, C, dtype=jnp.int32)
    labels = labels.at[3].set(C + 5)      # out-of-local-range label -> ignored row (-1)

    # 1) default tiling (tb capped by B, tc = C here); f32 weight input,
    #    pre-normalized and streamed as bf16 (f32 MXU accumulation).
    loss = partial_fc_v2_loss(embeddings, weight, labels)
    jax.block_until_ready(loss)
    ref = _reference_loss(embeddings, weight, labels, mxu_dtype=jnp.bfloat16)
    np.testing.assert_allclose(np.asarray(loss), np.asarray(ref), rtol=2e-3, atol=2e-3)

    # 2) multi-tile path (2 batch tiles x 2 class tiles, 2 lane-chunks per tile)
    #    with bf16 class-center weights in HBM (halves the streamed bytes).
    w_bf16 = weight.astype(jnp.bfloat16)
    loss2 = partial_fc_v2_loss(embeddings, w_bf16, labels, block_b=16, block_c=256)
    jax.block_until_ready(loss2)
    ref2 = _reference_loss(embeddings, w_bf16, labels, mxu_dtype=jnp.bfloat16)
    np.testing.assert_allclose(np.asarray(loss2), np.asarray(ref2), rtol=2e-3, atol=2e-3)

    print("KERNEL_OK")
</pallas_src>

<mosaic_0001>
module attributes {stable_mosaic.version = 11 : i64} {
  func.func @_partial_fc_kernel(%arg0: i32, %arg1: i32, %arg2: memref<32x128xbf16, #tpu.memory_space<vmem>>, %arg3: memref<128x512xbf16, #tpu.memory_space<vmem>>, %arg4: memref<32x1xi32, #tpu.memory_space<vmem>>, %arg5: memref<32x128xf32, #tpu.memory_space<vmem>>, %arg6: memref<32x128xf32, #tpu.memory_space<vmem>>, %arg7: memref<32x128xf32, #tpu.memory_space<vmem>>, %arg8: memref<32x128xf32, #tpu.memory_space<vmem>>) attributes {dimension_semantics = [#tpu.dimension_semantics<parallel>, #tpu.dimension_semantics<arbitrary>], iteration_bounds = array<i64: 1, 1>, scalar_prefetch = 0 : i64, scratch_operands = 3 : i64, tpu.core_type = #tpu.core_type<tc>, window_params = [{transform_indices = @transform_0, window_bounds = array<i64: 32, 128>}, {transform_indices = @transform_1, window_bounds = array<i64: 128, 512>}, {transform_indices = @transform_2, window_bounds = array<i64: 32, 1>}, {transform_indices = @transform_3, window_bounds = array<i64: 32, 128>}]} {
    %c0_i32 = arith.constant 0 : i32
    %0 = arith.cmpi eq, %arg1, %c0_i32 : i32
    %1 = arith.extui %0 : i1 to i32
    %c0_i32_0 = arith.constant 0 : i32
    %2 = arith.cmpi ne, %1, %c0_i32_0 : i32
    scf.if %2 {
      %cst_25 = arith.constant -1.000000e+30 : f32
      %68 = vector.broadcast %cst_25 : f32 to vector<32x128xf32>
      %c0_26 = arith.constant 0 : index
      %c0_27 = arith.constant 0 : index
      %69 = vector.load %arg6[%c0_26, %c0_27] : memref<32x128xf32, #tpu.memory_space<vmem>>, vector<32x128xf32>
      tpu.vector_store %arg6[%c0_26, %c0_27], %68 {strides = array<i32>} : memref<32x128xf32, #tpu.memory_space<vmem>>, vector<32x128xf32>,
      %cst_28 = arith.constant 0.000000e+00 : f32
      %70 = vector.broadcast %cst_28 : f32 to vector<32x128xf32>
      %c0_29 = arith.constant 0 : index
      %c0_30 = arith.constant 0 : index
      %71 = vector.load %arg7[%c0_29, %c0_30] : memref<32x128xf32, #tpu.memory_space<vmem>>, vector<32x128xf32>
      tpu.vector_store %arg7[%c0_29, %c0_30], %70 {strides = array<i32>} : memref<32x128xf32, #tpu.memory_space<vmem>>, vector<32x128xf32>,
      %cst_31 = arith.constant 0.000000e+00 : f32
      %72 = vector.broadcast %cst_31 : f32 to vector<32x128xf32>
      %c0_32 = arith.constant 0 : index
      %c0_33 = arith.constant 0 : index
      %73 = vector.load %arg8[%c0_32, %c0_33] : memref<32x128xf32, #tpu.memory_space<vmem>>, vector<32x128xf32>
      tpu.vector_store %arg8[%c0_32, %c0_33], %72 {strides = array<i32>} : memref<32x128xf32, #tpu.memory_space<vmem>>, vector<32x128xf32>,
    } else {
    }
    %c0 = arith.constant 0 : index
    %c0_1 = arith.constant 0 : index
    %3 = vector.load %arg2[%c0, %c0_1] : memref<32x128xbf16, #tpu.memory_space<vmem>>, vector<32x128xbf16>
    %c0_2 = arith.constant 0 : index
    %c0_3 = arith.constant 0 : index
    %4 = vector.load %arg3[%c0_2, %c0_3] : memref<128x512xbf16, #tpu.memory_space<vmem>>, vector<128x512xbf16>
    %cst = arith.constant dense<0.000000e+00> : vector<32x512xf32>
    %5 = tpu.matmul %3, %4, %cst {dimension_numbers = #tpu.dot_dimension_numbers<[1], [0], [0], [1], [0, 0, 1, 1], [], []>} : vector<32x128xbf16>, vector<128x512xbf16>, vector<32x512xf32> -> vector<32x512xf32>
    %cst_4 = arith.constant -1.000000e+00 : f32
    %cst_5 = arith.constant 1.000000e+00 : f32
    %6 = vector.broadcast %cst_4 : f32 to vector<32x512xf32>
    %7 = arith.maximumf %6, %5 : vector<32x512xf32>
    %8 = vector.broadcast %cst_5 : f32 to vector<32x512xf32>
    %9 = arith.minimumf %8, %7 : vector<32x512xf32>
    %c0_6 = arith.constant 0 : index
    %c0_7 = arith.constant 0 : index
    %10 = vector.load %arg4[%c0_6, %c0_7] : memref<32x1xi32, #tpu.memory_space<vmem>>, vector<32x1xi32>
    %c512_i32 = arith.constant 512 : i32
    %11 = arith.muli %arg1, %c512_i32 : i32
    %12 = tpu.iota {dimensions = array<i32: 1>} : vector<1x512xi32>
    %13 = vector.broadcast %11 : i32 to vector<1x512xi32>
    %14 = arith.addi %13, %12 : vector<1x512xi32>
    %15 = vector.broadcast %14 : vector<1x512xi32> to vector<32x512xi32>
    %16 = vector.broadcast %10 : vector<32x1xi32> to vector<32x512xi32>
    %17 = arith.cmpi eq, %15, %16 : vector<32x512xi32>
    %cst_8 = arith.constant 6.400000e+01 : f32
    %18 = vector.broadcast %cst_8 : f32 to vector<32x512xf32>
    %19 = arith.mulf %9, %18 : vector<32x512xf32>
    %cst_9 = arith.constant -1.000000e+30 : f32
    %20 = vector.broadcast %cst_9 : f32 to vector<32x512xf32>
    %21 = arith.select %17, %20, %19 : vector<32x512xi1>, vector<32x512xf32>
    %cst_10 = arith.constant 0.000000e+00 : f32
    %22 = vector.broadcast %cst_10 : f32 to vector<32x512xf32>
    %23 = arith.select %17, %9, %22 : vector<32x512xi1>, vector<32x512xf32>
    %c0_11 = arith.constant 0 : index
    %c0_12 = arith.constant 0 : index
    %24 = vector.load %arg8[%c0_11, %c0_12] : memref<32x128xf32, #tpu.memory_space<vmem>>, vector<32x128xf32>
    %25 = vector.extract_strided_slice %23 {offsets = [0, 0], sizes = [32, 128], strides = [1, 1]} : vector<32x512xf32> to vector<32x128xf32>
    %26 = arith.addf %24, %25 : vector<32x128xf32>
    %27 = vector.extract_strided_slice %23 {offsets = [0, 128], sizes = [32, 128], strides = [1, 1]} : vector<32x512xf32> to vector<32x128xf32>
    %28 = arith.addf %26, %27 : vector<32x128xf32>
    %29 = vector.extract_strided_slice %23 {offsets = [0, 256], sizes = [32, 128], strides = [1, 1]} : vector<32x512xf32> to vector<32x128xf32>
    %30 = arith.addf %28, %29 : vector<32x128xf32>
    %31 = vector.extract_strided_slice %23 {offsets = [0, 384], sizes = [32, 128], strides = [1, 1]} : vector<32x512xf32> to vector<32x128xf32>
    %32 = arith.addf %30, %31 : vector<32x128xf32>
    %c0_13 = arith.constant 0 : index
    %c0_14 = arith.constant 0 : index
    %33 = vector.load %arg8[%c0_13, %c0_14] : memref<32x128xf32, #tpu.memory_space<vmem>>, vector<32x128xf32>
    tpu.vector_store %arg8[%c0_13, %c0_14], %32 {strides = array<i32>} : memref<32x128xf32, #tpu.memory_space<vmem>>, vector<32x128xf32>,
    %c0_15 = arith.constant 0 : index
    %c0_16 = arith.constant 0 : index
    %34 = vector.load %arg6[%c0_15, %c0_16] : memref<32x128xf32, #tpu.memory_space<vmem>>, vector<32x128xf32>
    %35 = vector.extract_strided_slice %21 {offsets = [0, 0], sizes = [32, 128], strides = [1, 1]} : vector<32x512xf32> to vector<32x128xf32>
    %36 = arith.maximumf %34, %35 : vector<32x128xf32>
    %37 = vector.extract_strided_slice %21 {offsets = [0, 128], sizes = [32, 128], strides = [1, 1]} : vector<32x512xf32> to vector<32x128xf32>
    %38 = arith.maximumf %36, %37 : vector<32x128xf32>
    %39 = vector.extract_strided_slice %21 {offsets = [0, 256], sizes = [32, 128], strides = [1, 1]} : vector<32x512xf32> to vector<32x128xf32>
    %40 = arith.maximumf %38, %39 : vector<32x128xf32>
    %41 = vector.extract_strided_slice %21 {offsets = [0, 384], sizes = [32, 128], strides = [1, 1]} : vector<32x512xf32> to vector<32x128xf32>
    %42 = arith.maximumf %40, %41 : vector<32x128xf32>
    %c0_17 = arith.constant 0 : index
    %c0_18 = arith.constant 0 : index
    %43 = vector.load %arg7[%c0_17, %c0_18] : memref<32x128xf32, #tpu.memory_space<vmem>>, vector<32x128xf32>
    %44 = arith.subf %34, %42 : vector<32x128xf32>
    %45 = math.exp %44 : vector<32x128xf32>
    %46 = arith.mulf %43, %45 : vector<32x128xf32>
    %47 = vector.extract_strided_slice %21 {offsets = [0, 0], sizes = [32, 128], strides = [1, 1]} : vector<32x512xf32> to vector<32x128xf32>
    %48 = arith.subf %47, %42 : vector<32x128xf32>
    %49 = math.exp %48 : vector<32x128xf32>
    %50 = arith.addf %46, %49 : vector<32x128xf32>
    %51 = vector.extract_strided_slice %21 {offsets = [0, 128], sizes = [32, 128], strides = [1, 1]} : vector<32x512xf32> to vector<32x128xf32>
    %52 = arith.subf %51, %42 : vector<32x128xf32>
    %53 = math.exp %52 : vector<32x128xf32>
    %54 = arith.addf %50, %53 : vector<32x128xf32>
    %55 = vector.extract_strided_slice %21 {offsets = [0, 256], sizes = [32, 128], strides = [1, 1]} : vector<32x512xf32> to vector<32x128xf32>
    %56 = arith.subf %55, %42 : vector<32x128xf32>
    %57 = math.exp %56 : vector<32x128xf32>
    %58 = arith.addf %54, %57 : vector<32x128xf32>
    %59 = vector.extract_strided_slice %21 {offsets = [0, 384], sizes = [32, 128], strides = [1, 1]} : vector<32x512xf32> to vector<32x128xf32>
    %60 = arith.subf %59, %42 : vector<32x128xf32>
    %61 = math.exp %60 : vector<32x128xf32>
    %62 = arith.addf %58, %61 : vector<32x128xf32>
    %c0_19 = arith.constant 0 : index
    %c0_20 = arith.constant 0 : index
    %63 = vector.load %arg6[%c0_19, %c0_20] : memref<32x128xf32, #tpu.memory_space<vmem>>, vector<32x128xf32>
    tpu.vector_store %arg6[%c0_19, %c0_20], %42 {strides = array<i32>} : memref<32x128xf32, #tpu.memory_space<vmem>>, vector<32x128xf32>,
    %c0_21 = arith.constant 0 : index
    %c0_22 = arith.constant 0 : index
    %64 = vector.load %arg7[%c0_21, %c0_22] : memref<32x128xf32, #tpu.memory_space<vmem>>, vector<32x128xf32>
    tpu.vector_store %arg7[%c0_21, %c0_22], %62 {strides = array<i32>} : memref<32x128xf32, #tpu.memory_space<vmem>>, vector<32x128xf32>,
    %c0_i32_23 = arith.constant 0 : i32
    %65 = arith.cmpi eq, %arg1, %c0_i32_23 : i32
    %66 = arith.extui %65 : i1 to i32
    %c0_i32_24 = arith.constant 0 : i32
    %67 = arith.cmpi ne, %66, %c0_i32_24 : i32
    scf.if %67 {
      %c0_25 = arith.constant 0 : index
      %c0_26 = arith.constant 0 : index
      %68 = vector.load %arg8[%c0_25, %c0_26] : memref<32x128xf32, #tpu.memory_space<vmem>>, vector<32x128xf32>
      %cst_27 = arith.constant dense<0.000000e+00> : vector<32xf32>
      %69 = vector.multi_reduction <add>, %68, %cst_27 [1] : vector<32x128xf32> to vector<32xf32>
      %70 = vector.shape_cast %69 : vector<32xf32> to vector<32x1xf32>
      %71 = arith.mulf %70, %70 : vector<32x1xf32>
      %cst_28 = arith.constant 1.000000e+00 : f32
      %72 = vector.broadcast %cst_28 : f32 to vector<32x1xf32>
      %73 = arith.subf %72, %71 : vector<32x1xf32>
      %cst_29 = arith.constant 0.000000e+00 : f32
      %74 = vector.broadcast %cst_29 : f32 to vector<32x1xf32>
      %75 = arith.maximumf %73, %74 : vector<32x1xf32>
      %76 = math.sqrt %75 : vector<32x1xf32>
      %cst_30 = arith.constant -0.87758255 : f32
      %77 = vector.broadcast %cst_30 : f32 to vector<32x1xf32>
      %78 = arith.cmpf ogt, %70, %77 : vector<32x1xf32>
      %cst_31 = arith.constant 0.87758255 : f32
      %79 = vector.broadcast %cst_31 : f32 to vector<32x1xf32>
      %80 = arith.mulf %70, %79 : vector<32x1xf32>
      %cst_32 = arith.constant 0.47942555 : f32
      %81 = vector.broadcast %cst_32 : f32 to vector<32x1xf32>
      %82 = arith.mulf %76, %81 : vector<32x1xf32>
      %83 = arith.subf %80, %82 : vector<32x1xf32>
      %cst_33 = arith.constant 0.239712775 : f32
      %84 = vector.broadcast %cst_33 : f32 to vector<32x1xf32>
      %85 = arith.subf %70, %84 : vector<32x1xf32>
      %86 = arith.select %78, %83, %85 : vector<32x1xi1>, vector<32x1xf32>
      %cst_34 = arith.constant 6.400000e+01 : f32
      %87 = vector.broadcast %cst_34 : f32 to vector<32x1xf32>
      %88 = arith.mulf %86, %87 : vector<32x1xf32>
      %c0_35 = arith.constant 0 : index
      %c0_36 = arith.constant 0 : index
      %89 = vector.load %arg6[%c0_35, %c0_36] : memref<32x128xf32, #tpu.memory_space<vmem>>, vector<32x128xf32>
      %cst_37 = arith.constant dense<0xFF800000> : vector<32xf32>
      %90 = vector.multi_reduction <maximumf>, %89, %cst_37 [1] : vector<32x128xf32> to vector<32xf32>
      %91 = vector.shape_cast %90 : vector<32xf32> to vector<32x1xf32>
      %92 = arith.maximumf %91, %88 : vector<32x1xf32>
      %c0_38 = arith.constant 0 : index
      %c0_39 = arith.constant 0 : index
      %93 = vector.load %arg7[%c0_38, %c0_39] : memref<32x128xf32, #tpu.memory_space<vmem>>, vector<32x128xf32>
      %94 = vector.broadcast %92 : vector<32x1xf32> to vector<32x128xf32>
      %95 = arith.subf %89, %94 : vector<32x128xf32>
      %96 = math.exp %95 : vector<32x128xf32>
      %97 = arith.mulf %93, %96 : vector<32x128xf32>
      %cst_40 = arith.constant dense<0.000000e+00> : vector<32xf32>
      %98 = vector.multi_reduction <add>, %97, %cst_40 [1] : vector<32x128xf32> to vector<32xf32>
      %99 = vector.shape_cast %98 : vector<32xf32> to vector<32x1xf32>
      %100 = arith.subf %88, %92 : vector<32x1xf32>
      %101 = math.exp %100 : vector<32x1xf32>
      %102 = arith.addf %99, %101 : vector<32x1xf32>
      %103 = math.log %102 : vector<32x1xf32>
      %104 = arith.addf %92, %103 : vector<32x1xf32>
      %105 = arith.subf %104, %88 : vector<32x1xf32>
      %cst_41 = arith.constant 69.0775528 : f32
      %106 = vector.broadcast %cst_41 : f32 to vector<32x1xf32>
      %107 = arith.minimumf %105, %106 : vector<32x1xf32>
      %c-1_i32 = arith.constant -1 : i32
      %108 = vector.broadcast %c-1_i32 : i32 to vector<32x1xi32>
      %109 = arith.cmpi ne, %10, %108 : vector<32x1xi32>
      %cst_42 = arith.constant 69.0775528 : f32
      %110 = vector.broadcast %cst_42 : f32 to vector<32x1xf32>
      %111 = arith.select %109, %107, %110 : vector<32x1xi1>, vector<32x1xf32>
      %112 = vector.shape_cast %111 : vector<32x1xf32> to vector<32x1xf32>
      %113 = vector.broadcast %112 : vector<32x1xf32> to vector<32x128xf32>
      %c0_43 = arith.constant 0 : index
      %c0_44 = arith.constant 0 : index
      %114 = vector.load %arg5[%c0_43, %c0_44] : memref<32x128xf32, #tpu.memory_space<vmem>>, vector<32x128xf32>
      tpu.vector_store %arg5[%c0_43, %c0_44], %113 {strides = array<i32>} : memref<32x128xf32, #tpu.memory_space<vmem>>, vector<32x128xf32>,
    } else {
    }
    return
  }
  func.func @transform_0(%arg0: i32, %arg1: i32) -> (i32, i32) {
    %c0_i32 = arith.constant 0 : i32
    %c0_i32_0 = arith.constant 0 : i32
    return %arg0, %c0_i32 : i32, i32
  }
  func.func @transform_1(%arg0: i32, %arg1: i32) -> (i32, i32) {
    %c0_i32 = arith.constant 0 : i32
    %c0_i32_0 = arith.constant 0 : i32
    return %c0_i32, %arg1 : i32, i32
  }
  func.func @transform_2(%arg0: i32, %arg1: i32) -> (i32, i32) {
    %c0_i32 = arith.constant 0 : i32
    %c0_i32_0 = arith.constant 0 : i32
    return %arg0, %c0_i32 : i32, i32
  }
  func.func @transform_3(%arg0: i32, %arg1: i32) -> (i32, i32) {
    %c0_i32 = arith.constant 0 : i32
    %c0_i32_0 = arith.constant 0 : i32
    return %arg0, %c0_i32 : i32, i32
  }
}

</mosaic_0001>

<bundles_post_ra>
// kernel: _partial_fc_v2_loss_impl.1
= control target key start
LH: loop header
LB: loop body
LE: loop exit
PB: predicated region body
PF: predicated region fallthrough
CT: control target
= control target key end

     0   :  { %v982_v1 = vmov 0   ;;  %v382_v39 = vlaneseq  ;;  %s1464_s1 = inlined_call_operand.vmem [shape: bf16[128,512], index: 1, kind: input, shape index: {}]   ;;  %s1465_s0 = inlined_call_operand.vmem [shape: bf16[32,128], index: 0, kind: input, shape index: {}]   ;;  %s1466_s2 = inlined_call_operand.vmem [shape: s32[32,1], index: 2, kind: input, shape index: {}]   ;;  %s1467_s3 = inlined_call_operand.vmem [shape: f32[32,128], index: 3, kind: output, shape index: {}]  }
   0x1   :  { %v860_v0 = vld [vmem:[%s1464_s1 + $0xe4] ss:$16 sps:$4 sm:$0xff]   ;;  %271 = vmatprep.mubr.bf16.mxu0 %v982_v1  ;;  %324 = vmatprep.mubr.bf16.mxu1 %v982_v1  ;;  %v862_v2 = vld [vmem:[%s1464_s1 + $0xec] ss:$16 sps:$4 sm:$0xff]   ;;  %v864_v3 = vld [vmem:[%s1464_s1 + $0xe0] ss:$16 sps:$4 sm:$0xff]  }
   0x2   :  { %858 = vset.pattern.permute.xlu0 %v982_v1  ;;  %859 = vset.pattern.permute.xlu1 %v982_v1  ;;  %v865_v4 = vld [vmem:[%s1464_s1 + $0xe8] ss:$16 sps:$4 sm:$0xff]   ;;  %v866_v5 = vld [vmem:[%s1464_s1 + $0xc4] ss:$16 sps:$4 sm:$0xff]   ;;  %v868_v6 = vld [vmem:[%s1464_s1 + $0xcc] ss:$16 sps:$4 sm:$0xff]  }
   0x3   :  { %239 = vmatprep.subr.bf16.mxu0 %v860_v0  ;;  %292 = vmatprep.subr.bf16.mxu1 %v862_v2  ;;  %v870_v7 = vld [vmem:[%s1464_s1 + $0xc0] ss:$16 sps:$4 sm:$0xff]   ;;  %v871_v8 = vld [vmem:[%s1464_s1 + $0xc8] ss:$16 sps:$4 sm:$0xff]   ;;  %v872_v9 = vld [vmem:[%s1464_s1 + $0xa4] ss:$16 sps:$4 sm:$0xff]  }
   0x4   :  { %240 = vmatpush1.bf16.msra.mxu0 %v864_v3  ;;  %293 = vmatpush1.bf16.msra.mxu1 %v865_v4  ;;  %v874_v10 = vld [vmem:[%s1464_s1 + $0xac] ss:$16 sps:$4 sm:$0xff]   ;;  %v876_v11 = vld [vmem:[%s1464_s1 + $0xa0] ss:$16 sps:$4 sm:$0xff]   ;;  %v877_v12 = vld [vmem:[%s1464_s1 + $0xa8] ss:$16 sps:$4 sm:$0xff]  }
   0x5   :  { %241 = vmatprep.subr.bf16.mxu0 %v866_v5  ;;  %294 = vmatprep.subr.bf16.mxu1 %v868_v6  ;;  %v878_v13 = vld [vmem:[%s1464_s1 + $0x84] ss:$16 sps:$4 sm:$0xff]   ;;  %v880_v14 = vld [vmem:[%s1464_s1 + $0x8c] ss:$16 sps:$4 sm:$0xff]   ;;  %v882_v15 = vld [vmem:[%s1464_s1 + $0x80] ss:$16 sps:$4 sm:$0xff]  }
   0x6   :  { %v883_v16 = vld [vmem:[%s1464_s1 + $0x88] ss:$16 sps:$4 sm:$0xff]   ;;  %v884_v17 = vld [vmem:[%s1464_s1 + $0x64] ss:$16 sps:$4 sm:$0xff]   ;;  %v886_v18 = vld [vmem:[%s1464_s1 + $0x6c] ss:$16 sps:$4 sm:$0xff]  }
   0x7   :  { %v888_v19 = vld [vmem:[%s1464_s1 + $0x60] ss:$16 sps:$4 sm:$0xff]   ;;  %v889_v20 = vld [vmem:[%s1464_s1 + $0x68] ss:$16 sps:$4 sm:$0xff]   ;;  %v890_v21 = vld [vmem:[%s1464_s1 + $0x44] ss:$16 sps:$4 sm:$0xff]  }
   0x8   :  { %242 = vmatpush1.bf16.msra.mxu0 %v870_v7  ;;  %295 = vmatpush1.bf16.msra.mxu1 %v871_v8  ;;  %v892_v22 = vld [vmem:[%s1464_s1 + $0x4c] ss:$16 sps:$4 sm:$0xff]   ;;  %v894_v23 = vld [vmem:[%s1464_s1 + $0x40] ss:$16 sps:$4 sm:$0xff]   ;;  %v895_v24 = vld [vmem:[%s1464_s1 + $0x48] ss:$16 sps:$4 sm:$0xff]  }
   0x9   :  { %243 = vmatprep.subr.bf16.mxu0 %v872_v9  ;;  %296 = vmatprep.subr.bf16.mxu1 %v874_v10  ;;  %v896_v25 = vld [vmem:[%s1464_s1 + $0x24] ss:$16 sps:$4 sm:$0xff]   ;;  %v898_v26 = vld [vmem:[%s1464_s1 + $0x2c] ss:$16 sps:$4 sm:$0xff]   ;;  %v900_v28 = vld [vmem:[%s1464_s1 + $0x20] ss:$16 sps:$4 sm:$0xff]  }
   0xa   :  { %v1088_v27 = vld [vmem:[%s1466_s2] sm:$0xff]  ;;  %v901_v29 = vld [vmem:[%s1464_s1 + $0x28] ss:$16 sps:$4 sm:$0xff]   ;;  %v1099_v30 = vld [vmem:[%s1466_s2 + $0x10] sm:$0xff]  ;;  %v1135_v40 = vand.u32 127, %v382_v39 }
   0xb   :  { %v902_v31 = vld [vmem:[%s1464_s1 + $0x4] ss:$16 sps:$4 sm:$0xff]   ;;  %v904_v32 = vld [vmem:[%s1464_s1 + $0xc] ss:$16 sps:$4 sm:$0xff]   ;;  %393 = vperm.xlu0 %858, %v1088_v27   ;;  %399 = vperm.xlu1 %859, %v1099_v30   ;;  %v906_v35 = vld [vmem:[%s1464_s1] ss:$16 sps:$4 sm:$0xff]  }
   0xc   :  { %244 = vmatpush1.bf16.msra.mxu0 %v876_v11  ;;  %297 = vmatpush1.bf16.msra.mxu1 %v877_v12  ;;  %v1112_v33 = vld [vmem:[%s1466_s2 + $0x8] sm:$0xff]  ;;  %v1117_v34 = vld [vmem:[%s1466_s2 + $0x18] sm:$0xff]  ;;  %v908_v37 = vld [vmem:[%s1465_s0] sm:$0xff]   ;;  %v1140_v44 = vadd.s32 128, %v1135_v40  ;;  %v1147_v49 = vadd.s32 256, %v1135_v40  ;;  %v1150_v50 = vadd.s32 384, %v1135_v40 }
   0xd   :  { %245 = vmatprep.subr.bf16.mxu0 %v878_v13  ;;  %298 = vmatprep.subr.bf16.mxu1 %v880_v14  ;;  %v907_v36 = vld [vmem:[%s1464_s1 + $0x8] ss:$16 sps:$4 sm:$0xff]  }
   0xe   :  { %v909_v38 = vld [vmem:[%s1465_s0 + $0x8] sm:$0xff]  }
   0xf   :  { %396 = vperm.xlu0 %858, %v1112_v33   ;;  %402 = vperm.xlu1 %859, %v1117_v34  }
  0x10   :  { %246 = vmatpush1.bf16.msra.mxu0 %v882_v15  ;;  %299 = vmatpush1.bf16.msra.mxu1 %v883_v16 }
  0x11   :  { %247 = vmatprep.subr.bf16.mxu0 %v884_v17  ;;  %300 = vmatprep.subr.bf16.mxu1 %v886_v18 }
  0x14   :  { %248 = vmatpush1.bf16.msra.mxu0 %v888_v19  ;;  %301 = vmatpush1.bf16.msra.mxu1 %v889_v20 }
  0x15   :  { %249 = vmatprep.subr.bf16.mxu0 %v890_v21  ;;  %302 = vmatprep.subr.bf16.mxu1 %v892_v22 }
  0x18   :  { %250 = vmatpush1.bf16.msra.mxu0 %v894_v23  ;;  %303 = vmatpush1.bf16.msra.mxu1 %v895_v24 }
  0x19   :  { %251 = vmatprep.subr.bf16.mxu0 %v896_v25  ;;  %304 = vmatprep.subr.bf16.mxu1 %v898_v26 }
  0x1c   :  { %252 = vmatpush1.bf16.msra.mxu0 %v900_v28  ;;  %305 = vmatpush1.bf16.msra.mxu1 %v901_v29 }
  0x1d   :  { %253 = vmatprep.subr.bf16.mxu0 %v902_v31  ;;  %306 = vmatprep.subr.bf16.mxu1 %v904_v32 }
  0x20   :  { %254 = vmatpush1.bf16.msra.mxu0 %v906_v35  ;;  %307 = vmatpush1.bf16.msra.mxu1 %v907_v36 }
  0x23   :  { %272 = vmatmul.mubr.bf16.vlgmr.msra.gmra.mxu0 %v908_v37  ;;  %325 = vmatmul.mubr.bf16.vlgmr.msra.gmra.mxu1 %v908_v37 }
  0x24   :  { %281 = vmatprep.mubr.bf16.mxu0 %v982_v1  ;;  %334 = vmatprep.mubr.bf16.mxu1 %v982_v1 }
  0x2b   :  { %282 = vmatmul.mubr.bf16.gmra.mxu0 %v909_v38  ;;  %335 = vmatmul.mubr.bf16.gmra.mxu1 %v909_v38 }
  0x86   :  { %v1137_v41 = vpop.permute.xlu0 %393  ;;  %v1142_v46 = vpop.permute.xlu1 %399 }
  0x87   :  { %vm404_vm0 = vcmp.eq.s32.totalorder %v1135_v40, %v1137_v41  ;;  %vm405_vm1 = vcmp.eq.s32.totalorder %v1140_v44, %v1137_v41  ;;  %vm412_vm2 = vcmp.eq.s32.totalorder %v1135_v40, %v1142_v46  ;;  %vm414_vm3 = vcmp.eq.s32.totalorder %v1147_v49, %v1142_v46 }
  0x88   :  { %vm413_vm4 = vcmp.eq.s32.totalorder %v1140_v44, %v1142_v46  ;;  %vm406_vm7 = vcmp.eq.s32.totalorder %v1147_v49, %v1137_v41  ;;  %vm407_vm8 = vcmp.eq.s32.totalorder %v1150_v50, %v1137_v41  ;;  %vm415_vm14 = vcmp.eq.s32.totalorder %v1150_v50, %v1142_v46 }
  0x8a   :  { %v1152_v54 = vpop.permute.xlu0 %396  ;;  %v1184_v2 = vpop.permute.xlu1 %402 }
  0x8b   :  { %vm408_vm5 = vcmp.eq.s32.totalorder %v1135_v40, %v1152_v54  ;;  %vm409_vm6 = vcmp.eq.s32.totalorder %v1140_v44, %v1152_v54  ;;  %vm417_vm9 = vcmp.eq.s32.totalorder %v1140_v44, %v1184_v2  ;;  %vm410_vm10 = vcmp.eq.s32.totalorder %v1147_v49, %v1152_v54 }
  0x8c   :  { %vm416_vm11 = vcmp.eq.s32.totalorder %v1135_v40, %v1184_v2  ;;  %vm411_vm12 = vcmp.eq.s32.totalorder %v1150_v50, %v1152_v54  ;;  %vm418_vm13 = vcmp.eq.s32.totalorder %v1147_v49, %v1184_v2  ;;  %vm419_vm15 = vcmp.eq.s32.totalorder %v1150_v50, %v1184_v2 }
  0xe3   :  { %v273_v42 = vpop.f32.mrf.mxu0  ;;  %v326_v43 = vpop.f32.mrf.mxu1 }
  0xe4   :  { %v837_v45 = vclamps-f32 %v273_v42, 1.0  ;;  %v839_v52 = vclamps-f32 %v326_v43, 1.0 }
  0xe5   :  { %v275_v47 = vpop.f32.mrf.mxu0  ;;  %v1144_v48 = vpop.f32.mrf.mxu1 }
  0xe6   :  { %v420_v51 = vmul.f32 64.0, %v837_v45  ;;  %v838_v53 = vclamps-f32 %v275_v47, 1.0  ;;  %v422_v62 = vmul.f32 64.0, %v839_v52  ;;  %v452_v3 = vsel %vm404_vm0, %v837_v45, 0.0 }
  0xe7   :  { %v277_v55 = vpop.f32.mrf.mxu0  ;;  %v1158_v56 = vpop.f32.mrf.mxu1  ;;  %v840_v5 = vclamps-f32 %v1144_v48, 1.0  ;;  %v454_v18 = vsel %vm406_vm7, %v839_v52, 0.0 }
  0xe8   :  { %v421_v57 = vmul.f32 64.0, %v838_v53  ;;  %v1167_v58 = vsel %vm404_vm0, -1e+30, %v420_v51  ;;  %v841_v59 = vclamps-f32 %v277_v55, 1.0  ;;  %v453_v63 = vsel %vm405_vm1, %v838_v53, 0.0 }
  0xe9   :  { %v279_v60 = vpop.f32.mrf.mxu0  ;;  %v1175_v61 = vpop.f32.mrf.mxu1  ;;  %v496_v4 = vmax.f32 %v1167_v58, -1e+30  ;;  %v843_v6 = vclamps-f32 %v1158_v56, 1.0  ;;  %v476_v13 = vadd.f32 %v453_v63, %v452_v3  ;;  %v423_v24 = vmul.f32 64.0, %v840_v5 }
  0xea   :  { %v424_v0 = vmul.f32 64.0, %v841_v59  ;;  %v842_v1 = vclamps-f32 %v279_v60, 1.0  ;;  %v1195_v9 = vsel %vm405_vm1, -1e+30, %v421_v57  ;;  %v844_v14 = vclamps-f32 %v1175_v61, 1.0 }
  0xeb   :  { %v283_v7 = vpop.f32.mrf.mxu0  ;;  %v336_v8 = vpop.f32.mrf.mxu1  ;;  %v500_v23 = vmax.f32 %v496_v4, %v1195_v9  ;;  %v456_v26 = vsel %vm408_vm5, %v841_v59, 0.0  ;;  %v426_v31 = vmul.f32 64.0, %v843_v6  ;;  %v1239_v36 = vsel %vm406_vm7, -1e+30, %v422_v62 }
  0xec   :  { %v425_v10 = vmul.f32 64.0, %v842_v1  ;;  %v1200_v11 = vsel %vm408_vm5, -1e+30, %v424_v0  ;;  %v845_v12 = vclamps-f32 %v283_v7, 1.0  ;;  %v847_v15 = vclamps-f32 %v336_v8, 1.0 }
  0xed   :  { %v285_v16 = vpop.f32.mrf.mxu0  ;;  %v1203_v17 = vpop.f32.mrf.mxu1  ;;  %v457_v19 = vsel %vm409_vm6, %v842_v1, 0.0  ;;  %v497_v20 = vmax.f32 %v1200_v11, -1e+30  ;;  %v427_v38 = vmul.f32 64.0, %v844_v14  ;;  %v480_v55 = vadd.f32 %v476_v13, %v454_v18 }
  0xee   :  { %v428_v21 = vmul.f32 64.0, %v845_v12  ;;  %v846_v22 = vclamps-f32 %v285_v16, 1.0  ;;  %v1220_v25 = vsel %vm409_vm6, -1e+30, %v425_v10  ;;  %v477_v37 = vadd.f32 %v457_v19, %v456_v26 }
  0xef   :  { %v340_v28 = vpop.f32.mrf.mxu1  ;;  %v287_v29 = vpop.f32.mrf.mxu0  ;;  %v430_v39 = vmul.f32 64.0, %v847_v15  ;;  %v501_v45 = vmax.f32 %v497_v20, %v1220_v25  ;;  %v460_v47 = vsel %vm412_vm2, %v845_v12, 0.0  ;;  %v462_v48 = vsel %vm414_vm3, %v847_v15, 0.0 }
  0xf0   :  { %v1234_v32 = vsel %vm412_vm2, -1e+30, %v428_v21  ;;  %v429_v35 = vmul.f32 64.0, %v846_v22  ;;  %v851_v42 = vclamps-f32 %v340_v28, 1.0  ;;  %v461_v51 = vsel %vm413_vm4, %v846_v22, 0.0 }
  0xf1   :  { %v289_v43 = vpop.f32.mrf.mxu0  ;;  %v498_v52 = vmax.f32 %v1234_v32, -1e+30  ;;  %v848_v53 = vclamps-f32 %v1203_v17, 1.0  ;;  %v504_v57 = vmax.f32 %v500_v23, %v1239_v36  ;;  %v455_v60 = vsel %vm407_vm8, %v840_v5, 0.0  ;;  %v342_v0 = vpop.f32.mrf.mxu1 }
  0xf2   :  { %v1263_v59 = vsel %vm413_vm4, -1e+30, %v429_v35  ;;  %v849_v62 = vclamps-f32 %v287_v29, 1.0  ;;  %v850_v63 = vclamps-f32 %v289_v43, 1.0  ;;  %v1271_v1 = vsel %vm414_vm3, -1e+30, %v430_v39 }
  0xf3   :  { %v478_v3 = vadd.f32 %v461_v51, %v460_v47  ;;  %v434_v4 = vmul.f32 64.0, %v851_v42  ;;  %v484_v7 = vadd.f32 %v480_v55, %v455_v60  ;;  %v439_v8 = vsel %vm407_vm8, -1e+30, %v423_v24 }
  0xf4   :  { %v432_v10 = vmul.f32 64.0, %v849_v62  ;;  %v433_v5 = vmul.f32 64.0, %v850_v63  ;;  %v465_v12 = vsel %vm417_vm9, %v850_v63, 0.0  ;;  %v502_v13 = vmax.f32 %v498_v52, %v1263_v59 }
  0xf5   :  { %v431_v15 = vmul.f32 64.0, %v848_v53  ;;  %611 = vadd.xlane.f32.xlu0 %v484_v7  ;;  %v1282_v16 = vmax.f32 %v504_v57, %v439_v8  ;;  %v852_v17 = vclamps-f32 %v342_v0, 1.0  ;;  %v464_v41 = vsel %vm416_vm11, %v849_v62, 0.0 }
  0xf6   :  { %v1287_v18 = vsel %vm416_vm11, -1e+30, %v432_v10  ;;  %v1295_v19 = vsel %vm417_vm9, -1e+30, %v433_v5  ;;  %v458_v20 = vsel %vm410_vm10, %v843_v6, 0.0  ;;  %v479_v22 = vadd.f32 %v465_v12, %v464_v41 }
  0xf7   :  { %v499_v21 = vmax.f32 %v1287_v18, -1e+30  ;;  %v442_v23 = vsel %vm410_vm10, -1e+30, %v426_v31  ;;  %v481_v40 = vadd.f32 %v477_v37, %v458_v20  ;;  %v1309_v44 = vsel %vm418_vm13, -1e+30, %v434_v4 }
  0xf8   :  { %v466_v56 = vsel %vm418_vm13, %v851_v42, 0.0  ;;  %v459_v6 = vsel %vm411_vm12, %v844_v14, 0.0  ;;  %v505_v24 = vmax.f32 %v501_v45, %v442_v23  ;;  %v564_v26 = vsub.f32 %v1239_v36, %v1282_v16 }
  0xf9   :  { %v503_v28 = vmax.f32 %v499_v21, %v1295_v19  ;;  %v443_v29 = vsel %vm411_vm12, -1e+30, %v427_v38  ;;  %v485_v31 = vadd.f32 %v481_v40, %v459_v6  ;;  %v580_v49 = vsub.f32 %v439_v8, %v1282_v16 }
  0xfa   :  { %v1326_v35 = vmax.f32 %v505_v24, %v443_v29  ;;  %v482_v61 = vadd.f32 %v478_v3, %v462_v48  ;;  %v506_v37 = vmax.f32 %v502_v13, %v1271_v1  ;;  %v435_v39 = vmul.f32 64.0, %v852_v17 }
  0xfb   :  { %613 = vadd.xlane.f32.xlu1 %v485_v31  ;;  %v463_v14 = vsel %vm415_vm14, %v848_v53, 0.0  ;;  %v483_v36 = vadd.f32 %v479_v22, %v466_v56  ;;  %v516_v42 = vsub.f32 -1e+30, %v1282_v16  ;;  %v467_v54 = vsel %vm419_vm15, %v852_v17, 0.0 }
  0xfc   :  { %v565_v38 = vsub.f32 %v442_v23, %v1326_v35  ;;  %v486_v43 = vadd.f32 %v482_v61, %v463_v14  ;;  %v532_v45 = vsub.f32 %v1167_v58, %v1282_v16  ;;  %v568_v47 = vmul.f32 1.442695, %v564_v26 }
  0xfd   :  { %v507_v48 = vmax.f32 %v503_v28, %v1309_v44  ;;  %v447_v51 = vsel %vm415_vm14, -1e+30, %v431_v15  ;;  %v520_v52 = vmul.f32 1.442695, %v516_v42  ;;  %v584_v53 = vmul.f32 1.442695, %v580_v49 }
  0xfe   :  { %615 = vadd.xlane.f32.xlu0 %v486_v43  ;;  %v1343_v55 = vmax.f32 %v506_v37, %v447_v51  ;;  %v487_v57 = vadd.f32 %v483_v36, %v467_v54  ;;  %v548_v60 = vsub.f32 %v1195_v9, %v1282_v16  ;;  %v570_v62 = vmul.f32 1.442695, %v565_v38 }
  0xff   :  { %v581_v63 = vsub.f32 %v443_v29, %v1326_v35  ;;  %691 = vmax.xlane.f32.xlu1 %v1282_v16  ;;  %910 = vpow2.f32 %v520_v52  ;;  %v517_v58 = vsub.f32 -1e+30, %v1326_v35  ;;  %v451_v46 = vsel %vm419_vm15, -1e+30, %v435_v39 }
 0x100   :  { %v536_v0 = vmul.f32 1.442695, %v532_v45  ;;  %v533_v3 = vsub.f32 %v1200_v11, %v1326_v35  ;;  %912 = vpow2.f32 %v568_v47  ;;  %v1355_v4 = vmax.f32 %v507_v48, %v451_v46 }
 0x101   :  { %v552_v9 = vmul.f32 1.442695, %v548_v60  ;;  %914 = vpow2.f32 %v584_v53  ;;  %v522_v7 = vmul.f32 1.442695, %v517_v58  ;;  %v549_v8 = vsub.f32 %v1220_v25, %v1326_v35 }
 0x102   :  { %617 = vadd.xlane.f32.xlu0 %v487_v57  ;;  %v518_v10 = vsub.f32 -1e+30, %v1343_v55  ;;  %916 = vpow2.f32 %v570_v62  ;;  %v586_v5 = vmul.f32 1.442695, %v581_v63  ;;  %v534_v50 = vsub.f32 %v1234_v32, %v1343_v55 }
 0x103   :  { %695 = vmax.xlane.f32.xlu1 %v1343_v55  ;;  %918 = vpow2.f32 %v536_v0  ;;  %v538_v2 = vmul.f32 1.442695, %v533_v3  ;;  %v550_v11 = vsub.f32 %v1263_v59, %v1343_v55  ;;  %v519_v13 = vsub.f32 -1e+30, %v1355_v4 }
 0x104   :  { %920 = vpow2.f32 %v552_v9  ;;  %v524_v12 = vmul.f32 1.442695, %v518_v10  ;;  %v554_v25 = vmul.f32 1.442695, %v549_v8  ;;  %v566_v15 = vsub.f32 %v1271_v1, %v1343_v55 }
 0x105   :  { %922 = vpow2.f32 %v522_v7  ;;  %v540_v17 = vmul.f32 1.442695, %v534_v50  ;;  %v535_v32 = vsub.f32 %v1287_v18, %v1355_v4  ;;  %v582_v41 = vsub.f32 %v447_v51, %v1343_v55 }
 0x106   :  { %693 = vmax.xlane.f32.xlu0 %v1326_v35  ;;  %924 = vpow2.f32 %v586_v5  ;;  %v556_v59 = vmul.f32 1.442695, %v550_v11  ;;  %v526_v20 = vmul.f32 1.442695, %v519_v13  ;;  %v551_v21 = vsub.f32 %v1295_v19, %v1355_v4 }
 0x107   :  { %926 = vpow2.f32 %v538_v2  ;;  %v572_v22 = vmul.f32 1.442695, %v566_v15  ;;  %v542_v1 = vmul.f32 1.442695, %v535_v32  ;;  %v567_v23 = vsub.f32 %v1309_v44, %v1355_v4 }
 0x108   :  { %928 = vpow2.f32 %v524_v12  ;;  %v588_v18 = vmul.f32 1.442695, %v582_v41  ;;  %v583_v56 = vsub.f32 %v451_v46, %v1355_v4  ;;  %v558_v6 = vmul.f32 1.442695, %v551_v21 }
 0x109   :  { %930 = vpow2.f32 %v554_v25  ;;  %v574_v28 = vmul.f32 1.442695, %v567_v23  ;;  %vm767_vm12 = vcmp.ne.s32.totalorder %v1088_v27, 4294967295  ;;  %vm768_vm13 = vcmp.ne.s32.totalorder %v1112_v33, 4294967295 }
 0x10a   :  { %697 = vmax.xlane.f32.xlu0 %v1355_v4  ;;  %932 = vpow2.f32 %v540_v17  ;;  %v590_v49 = vmul.f32 1.442695, %v583_v56  ;;  %vm769_vm14 = vcmp.ne.s32.totalorder %v1099_v30, 4294967295  ;;  %vm770_vm15 = vcmp.ne.s32.totalorder %v1117_v34, 4294967295 }
 0x10b   :  { %934 = vpow2.f32 %v556_v59 }
 0x10c   :  { %v911_v40 = vpop.eup %910  ;;  %936 = vpow2.f32 %v526_v20 }
 0x10d   :  { %v913_v24 = vpop.eup %912  ;;  %v528_v26 = vmul.f32 0.0, %v911_v40  ;;  %938 = vpow2.f32 %v572_v22 }
 0x10e   :  { %v915_v19 = vpop.eup %914  ;;  %940 = vpow2.f32 %v542_v1 }
 0x10f   :  { %v917_v29 = vpop.eup %916  ;;  %942 = vpow2.f32 %v588_v18 }
 0x110   :  { %v919_v31 = vpop.eup %918  ;;  %944 = vpow2.f32 %v558_v6 }
 0x111   :  { %v921_v61 = vpop.eup %920  ;;  %v544_v44 = vadd.f32 %v919_v31, %v528_v26  ;;  %946 = vpow2.f32 %v574_v28 }
 0x112   :  { %v923_v37 = vpop.eup %922  ;;  %948 = vpow2.f32 %v590_v49 }
 0x113   :  { %v925_v39 = vpop.eup %924  ;;  %v560_v14 = vadd.f32 %v921_v61, %v544_v44  ;;  %v529_v36 = vmul.f32 0.0, %v923_v37 }
 0x114   :  { %v927_v42 = vpop.eup %926 }
 0x115   :  { %v929_v54 = vpop.eup %928  ;;  %v576_v38 = vadd.f32 %v913_v24, %v560_v14  ;;  %v545_v43 = vadd.f32 %v927_v42, %v529_v36 }
 0x116   :  { %v931_v45 = vpop.eup %930  ;;  %v530_v47 = vmul.f32 0.0, %v929_v54 }
 0x117   :  { %v933_v48 = vpop.eup %932  ;;  %v1378_v51 = vadd.f32 %v915_v19, %v576_v38  ;;  %v561_v52 = vadd.f32 %v931_v45, %v545_v43 }
 0x118   :  { %v935_v53 = vpop.eup %934  ;;  %v546_v57 = vadd.f32 %v933_v48, %v530_v47 }
 0x119   :  { %v937_v60 = vpop.eup %936  ;;  %v577_v62 = vadd.f32 %v917_v29, %v561_v52 }
 0x11a   :  { %v939_v63 = vpop.eup %938  ;;  %v562_v58 = vadd.f32 %v935_v53, %v546_v57  ;;  %v531_v46 = vmul.f32 0.0, %v937_v60 }
 0x11b   :  { %v941_v0 = vpop.eup %940  ;;  %v1380_v3 = vadd.f32 %v925_v39, %v577_v62 }
 0x11c   :  { %v943_v9 = vpop.eup %942  ;;  %v578_v7 = vadd.f32 %v939_v63, %v562_v58  ;;  %v547_v8 = vadd.f32 %v941_v0, %v531_v46 }
 0x11d   :  { %v945_v10 = vpop.eup %944 }
 0x11e   :  { %v1382_v5 = vadd.f32 %v943_v9, %v578_v7  ;;  %v563_v50 = vadd.f32 %v945_v10, %v547_v8  ;;  %v947_v2 = vpop.eup %946 }
 0x11f   :  { %v949_v12 = vpop.eup %948 }
 0x120   :  { %v579_v11 = vadd.f32 %v947_v2, %v563_v50 }
 0x122   :  { %v1384_v13 = vadd.f32 %v949_v12, %v579_v11 }
 0x17e   :  { %v612_v25 = vpop.xlane.xlu0 %611 }
 0x17f   :  { %v619_v15 = vmul.f32 %v612_v25, %v612_v25  ;;  %v663_v49 = vmul.f32 0.87758255, %v612_v25  ;;  %v853_v39 = vadd.f32 -0.23971277, %v612_v25  ;;  %vm659_vm2 = vcmp.gt.f32.partialorder %v612_v25, -0.87758255 }
 0x181   :  { %v623_v17 = vsub.f32 1.0, %v619_v15 }
 0x183   :  { %v627_v32 = vmax.f32 %v623_v17, 0.0 }
 0x184   :  { %v614_v41 = vpop.xlane.xlu1 %613 }
 0x185   :  { %950 = vrsqrt.f32 %v627_v32  ;;  %v620_v59 = vmul.f32 %v614_v41, %v614_v41  ;;  %vm633_vm0 = vcmp.eq.f32.partialorder %v627_v32, inf  ;;  %v636_v28 = vand.u32 2147483648, %v627_v32 }
 0x186   :  { %vm635_vm1 = vcmp.eq.f32.partialorder %v627_v32, 0.0  ;;  %v664_v47 = vmul.f32 0.87758255, %v614_v41  ;;  %v854_v58 = vadd.f32 -0.23971277, %v614_v41 }
 0x187   :  { %v1386_v20 = vpop.xlane.xlu0 %615  ;;  %v624_v21 = vsub.f32 1.0, %v620_v59  ;;  %vm660_vm7 = vcmp.gt.f32.partialorder %v614_v41, -0.87758255 }
 0x188   :  { %v621_v22 = vmul.f32 %v1386_v20, %v1386_v20  ;;  %v692_v48 = vpop.xlane.xlu1 %691  ;;  %v665_v7 = vmul.f32 0.87758255, %v1386_v20  ;;  %v855_v50 = vadd.f32 -0.23971277, %v1386_v20  ;;  %vm661_vm9 = vcmp.gt.f32.partialorder %v1386_v20, -0.87758255 }
 0x189   :  { %v628_v1 = vmax.f32 %v624_v21, 0.0 }
 0x18a   :  { %v625_v23 = vsub.f32 1.0, %v621_v22 }
 0x18b   :  { %v1390_v40 = vpop.xlane.xlu0 %617  ;;  %952 = vrsqrt.f32 %v628_v1  ;;  %vm640_vm3 = vcmp.eq.f32.partialorder %v628_v1, inf  ;;  %v643_v36 = vand.u32 2147483648, %v628_v1  ;;  %vm642_vm4 = vcmp.eq.f32.partialorder %v628_v1, 0.0 }
 0x18c   :  { %v629_v18 = vmax.f32 %v625_v23, 0.0  ;;  %v622_v56 = vmul.f32 %v1390_v40, %v1390_v40  ;;  %v666_v22 = vmul.f32 0.87758255, %v1390_v40  ;;  %v696_v23 = vpop.xlane.xlu1 %695  ;;  %vm662_vm11 = vcmp.gt.f32.partialorder %v1390_v40, -0.87758255 }
 0x18e   :  { %954 = vrsqrt.f32 %v629_v18  ;;  %v626_v6 = vsub.f32 1.0, %v622_v56  ;;  %vm647_vm5 = vcmp.eq.f32.partialorder %v629_v18, inf  ;;  %v650_v60 = vand.u32 2147483648, %v629_v18 }
 0x18f   :  { %vm649_vm6 = vcmp.eq.f32.partialorder %v629_v18, 0.0  ;;  %v694_v17 = vpop.xlane.xlu0 %693 }
 0x190   :  { %v630_v26 = vmax.f32 %v626_v6, 0.0  ;;  %v856_v6 = vadd.f32 -0.23971277, %v1390_v40 }
 0x192   :  { %v951_v24 = vpop.eup %950  ;;  %956 = vrsqrt.f32 %v630_v26  ;;  %vm654_vm8 = vcmp.eq.f32.partialorder %v630_v26, inf  ;;  %v657_v25 = vand.u32 2147483648, %v630_v26  ;;  %vm656_vm10 = vcmp.eq.f32.partialorder %v630_v26, 0.0 }
 0x193   :  { %v632_v19 = vmul.f32 %v951_v24, %v627_v32 }
 0x195   :  { %v634_v29 = vsel %vm633_vm0, %v627_v32, %v632_v19 }
 0x196   :  { %v637_v31 = vsel %vm635_vm1, %v636_v28, %v634_v29 }
 0x197   :  { %v667_v61 = vmul.f32 0.47942555, %v637_v31  ;;  %v698_v31 = vpop.xlane.xlu0 %697 }
 0x198   :  { %v953_v44 = vpop.eup %952 }
 0x199   :  { %v671_v37 = vsub.f32 %v663_v49, %v667_v61  ;;  %v639_v14 = vmul.f32 %v953_v44, %v628_v1 }
 0x19b   :  { %v679_v42 = vsel %vm659_vm2, %v671_v37, %v853_v39  ;;  %v955_v54 = vpop.eup %954  ;;  %v641_v38 = vsel %vm640_vm3, %v628_v1, %v639_v14 }
 0x19c   :  { %v1394_v43 = vmul.f32 64.0, %v679_v42  ;;  %v644_v45 = vsel %vm642_vm4, %v643_v36, %v641_v38  ;;  %v646_v52 = vmul.f32 %v955_v54, %v629_v18 }
 0x19d   :  { %v668_v53 = vmul.f32 0.47942555, %v644_v45 }
 0x19e   :  { %v1397_v57 = vmax.f32 %v692_v48, %v1394_v43  ;;  %v648_v62 = vsel %vm647_vm5, %v629_v18, %v646_v52 }
 0x19f   :  { %v672_v63 = vsub.f32 %v664_v47, %v668_v53  ;;  %v651_v0 = vsel %vm649_vm6, %v650_v60, %v648_v62  ;;  %v957_v9 = vpop.eup %956 }
 0x1a0   :  { %v707_v46 = vsub.f32 %v1282_v16, %v1397_v57  ;;  %v669_v8 = vmul.f32 0.47942555, %v651_v0  ;;  %v653_v2 = vmul.f32 %v957_v9, %v630_v26 }
 0x1a1   :  { %v680_v11 = vsel %vm660_vm7, %v672_v63, %v854_v58 }
 0x1a2   :  { %v711_v10 = vmul.f32 1.442695, %v707_v46  ;;  %v673_v12 = vsub.f32 %v665_v7, %v669_v8  ;;  %v1403_v15 = vmul.f32 64.0, %v680_v11  ;;  %v655_v16 = vsel %vm654_vm8, %v630_v26, %v653_v2 }
 0x1a3   :  { %v658_v41 = vsel %vm656_vm10, %v657_v25, %v655_v16 }
 0x1a4   :  { %958 = vpow2.f32 %v711_v10  ;;  %v681_v32 = vsel %vm661_vm9, %v673_v12, %v855_v50  ;;  %v1407_v59 = vmax.f32 %v694_v17, %v1403_v15  ;;  %v670_v1 = vmul.f32 0.47942555, %v658_v41 }
 0x1a5   :  { %v1409_v21 = vmul.f32 64.0, %v681_v32 }
 0x1a6   :  { %v708_v18 = vsub.f32 %v1326_v35, %v1407_v59  ;;  %v674_v20 = vsub.f32 %v666_v22, %v670_v1 }
 0x1a7   :  { %v1415_v56 = vmax.f32 %v696_v23, %v1409_v21 }
 0x1a8   :  { %v713_v24 = vmul.f32 1.442695, %v708_v18  ;;  %v682_v19 = vsel %vm662_vm11, %v674_v20, %v856_v6 }
 0x1a9   :  { %v709_v26 = vsub.f32 %v1343_v55, %v1415_v56  ;;  %v1421_v28 = vmul.f32 64.0, %v682_v19 }
 0x1aa   :  { %960 = vpow2.f32 %v713_v24 }
 0x1ab   :  { %v715_v29 = vmul.f32 1.442695, %v709_v26  ;;  %v1424_v35 = vmax.f32 %v698_v31, %v1421_v28 }
 0x1ad   :  { %962 = vpow2.f32 %v715_v29  ;;  %v710_v49 = vsub.f32 %v1355_v4, %v1424_v35  ;;  %v731_v4 = vsub.f32 %v1394_v43, %v1397_v57 }
 0x1af   :  { %v717_v44 = vmul.f32 1.442695, %v710_v49  ;;  %v735_v54 = vmul.f32 1.442695, %v731_v4 }
 0x1b1   :  { %v959_v61 = vpop.eup %958  ;;  %964 = vpow2.f32 %v717_v44 }
 0x1b2   :  { %v719_v40 = vmul.f32 %v959_v61, %v1378_v51  ;;  %v732_v51 = vsub.f32 %v1403_v15, %v1407_v59  ;;  %966 = vpow2.f32 %v735_v54 }
 0x1b4   :  { %723 = vadd.xlane.f32.xlu1 %v719_v40  ;;  %v737_v38 = vmul.f32 1.442695, %v732_v51 }
 0x1b6   :  { %968 = vpow2.f32 %v737_v38 }
 0x1b7   :  { %v961_v55 = vpop.eup %960 }
 0x1b8   :  { %v720_v37 = vmul.f32 %v961_v55, %v1380_v3  ;;  %v733_v3 = vsub.f32 %v1409_v21, %v1415_v56 }
 0x1ba   :  { %v963_v39 = vpop.eup %962  ;;  %725 = vadd.xlane.f32.xlu0 %v720_v37  ;;  %v739_v45 = vmul.f32 1.442695, %v733_v3 }
 0x1bb   :  { %v721_v14 = vmul.f32 %v963_v39, %v1382_v5  ;;  %v734_v5 = vsub.f32 %v1421_v28, %v1424_v35 }
 0x1bc   :  { %970 = vpow2.f32 %v739_v45 }
 0x1bd   :  { %727 = vadd.xlane.f32.xlu1 %v721_v14 }
 0x1be   :  { %v965_v36 = vpop.eup %964 }
 0x1bf   :  { %v722_v42 = vmul.f32 %v965_v36, %v1384_v13  ;;  %v741_v13 = vmul.f32 1.442695, %v734_v5  ;;  %v967_v47 = vpop.eup %966 }
 0x1c1   :  { %729 = vadd.xlane.f32.xlu0 %v722_v42  ;;  %972 = vpow2.f32 %v741_v13 }
 0x1c3   :  { %v969_v53 = vpop.eup %968 }
 0x1c9   :  { %v971_v63 = vpop.eup %970 }
 0x1ce   :  { %v973_v0 = vpop.eup %972 }
 0x23d   :  { %v724_v48 = vpop.xlane.xlu1 %723 }
 0x23e   :  { %v743_v52 = vadd.f32 %v967_v47, %v724_v48 }
 0x240   :  { %974 = vlog2.f32 %v743_v52 }
 0x243   :  { %v726_v60 = vpop.xlane.xlu0 %725 }
 0x244   :  { %v744_v62 = vadd.f32 %v969_v53, %v726_v60 }
 0x246   :  { %976 = vlog2.f32 %v744_v62  ;;  %v728_v58 = vpop.xlane.xlu1 %727 }
 0x247   :  { %v745_v46 = vadd.f32 %v971_v63, %v728_v58 }
 0x249   :  { %978 = vlog2.f32 %v745_v46 }
 0x24a   :  { %v730_v9 = vpop.xlane.xlu0 %729 }
 0x24b   :  { %v746_v8 = vadd.f32 %v973_v0, %v730_v9 }
 0x24d   :  { %v975_v7 = vpop.eup %974  ;;  %980 = vlog2.f32 %v746_v8 }
 0x24e   :  { %v748_v10 = vmul.f32 0.6931472, %v975_v7 }
 0x250   :  { %v755_v50 = vadd.f32 %v748_v10, %v1397_v57 }
 0x252   :  { %v759_v2 = vsub.f32 %v755_v50, %v1394_v43 }
 0x253   :  { %v977_v11 = vpop.eup %976 }
 0x254   :  { %v763_v12 = vmin.f32 %v759_v2, 69.07755  ;;  %v750_v25 = vmul.f32 0.6931472, %v977_v11 }
 0x256   :  { %v771_v16 = vsel %vm767_vm12, %v763_v12, 69.07755  ;;  %v979_v17 = vpop.eup %978  ;;  %v756_v32 = vadd.f32 %v750_v25, %v1407_v59 }
 0x257   :  { %777 = vperm.xlu1 %859, %v771_v16   ;;  %v752_v41 = vmul.f32 0.6931472, %v979_v17 }
 0x258   :  { %v760_v22 = vsub.f32 %v756_v32, %v1403_v15 }
 0x259   :  { %v757_v1 = vadd.f32 %v752_v41, %v1415_v56 }
 0x25a   :  { %v764_v57 = vmin.f32 %v760_v22, 69.07755  ;;  %v981_v23 = vpop.eup %980 }
 0x25b   :  { %v761_v43 = vsub.f32 %v757_v1, %v1409_v21  ;;  %v754_v27 = vmul.f32 0.6931472, %v981_v23 }
 0x25c   :  { %v772_v18 = vsel %vm768_vm13, %v764_v57, 69.07755 }
 0x25d   :  { %782 = vperm.xlu0 %858, %v772_v18   ;;  %v765_v20 = vmin.f32 %v761_v43, 69.07755  ;;  %v758_v6 = vadd.f32 %v754_v27, %v1424_v35 }
 0x25f   :  { %v773_v59 = vsel %vm769_vm14, %v765_v20, 69.07755  ;;  %v762_v15 = vsub.f32 %v758_v6, %v1421_v28 }
 0x260   :  { %787 = vperm.xlu1 %859, %v773_v59  }
 0x261   :  { %v766_v33 = vmin.f32 %v762_v15, 69.07755 }
 0x263   :  { %v774_v56 = vsel %vm770_vm15, %v766_v33, 69.07755 }
 0x264   :  { %792 = vperm.xlu1 %859, %v774_v56  }
 0x2d2   :  { %v778_v24 = vpop.permute.xlu1 %777 }
 0x2d3   :  { %795 = vst [vmem:[%s1467_s3] sm:$0xff] %v778_v24 }
 0x2d8   :  { %v783_v30 = vpop.permute.xlu0 %782 }
 0x2d9   :  { %796 = vst [vmem:[%s1467_s3 + $0x8] sm:$0xff] %v783_v30 }
 0x2db   :  { %v788_v21 = vpop.permute.xlu1 %787 }
 0x2dc   :  { %797 = vst [vmem:[%s1467_s3 + $0x10] sm:$0xff] %v788_v21 }
 0x2df   :  { %v793_v26 = vpop.permute.xlu1 %792 }
 0x2e0   :  { %798 = vst [vmem:[%s1467_s3 + $0x18] sm:$0xff] %v793_v26 }

</bundles_post_ra>
